<compile_context>
chip_gen: v7x
topology: tpu7x:2x2x1
jax: 0.10.0
libtpu: 0.0.40
codegen_flags: <defaults>
</compile_context>

<pallas_src>
import jax
import jax.numpy as jnp
from jax.experimental import pallas as pl
from jax.experimental.pallas import tpu as pltpu


# ---------------------------------------------------------------------------
# Fused Pallas kernel: whole encoder step (all layers) for ONE batch element.
# Grid = (B,), marked "parallel" so v7x's two TensorCores split the batch.
# ---------------------------------------------------------------------------
def make_encoder_kernel(num_layers, K, units):
    """kernel(x, h_all, A, *per_layer_weights, hs_out) with per-layer refs:
         wx_all ((K+1)*Din, 3U) bf16   -- [W_ru_x | W_c_x] packed on outputs
         wh_ru  ((K+1)*U,   2U) bf16
         wh_c   ((K+1)*U,    U) bf16
         b_all  (1, 3U)          f32   -- [b_ru | b_c]
       States are (N, feat) per batch element (batch squeezed by BlockSpec)."""
    U = units

    def kernel(*refs):
        x_ref, h_ref, a_ref = refs[0], refs[1], refs[2]
        w_refs = refs[3:3 + 4 * num_layers]
        hs_ref = refs[3 + 4 * num_layers]

        A = a_ref[...]                                  # (N, N) bf16 support^T

        def diffuse(z):                                 # one hop, f32 in/out
            return jnp.dot(A, z.astype(jnp.bfloat16),
                           preferred_element_type=jnp.float32)

        def diffusion_cat(z):
            # [T0 | T1 | ... | TK] concatenated along features (k-major),
            # so ONE matmul against the k-concatenated weight replaces K+1
            # tiny-contraction MXU pushes.
            terms = [z]
            if K >= 1:
                z0, z1 = z, diffuse(z)
                terms.append(z1)
                for _ in range(2, K + 1):
                    z2 = 2.0 * diffuse(z1) - z0         # Chebyshev, f32
                    terms.append(z2)
                    z0, z1 = z1, z2
            if len(terms) == 1:
                return terms[0]
            return jnp.concatenate(terms, axis=-1)

        def wmat(z_cat, w_ref):                         # fused weight matmul
            return jnp.dot(z_cat.astype(jnp.bfloat16), w_ref[...],
                           preferred_element_type=jnp.float32)

        inp = x_ref[...]                                # (N, Din) f32
        for layer in range(num_layers):
            wx_all, wh_ru, wh_c, b_all = w_refs[4 * layer: 4 * (layer + 1)]
            h = h_ref[layer]                            # (N, U) f32

            x_cat = diffusion_cat(inp)                  # (N, (K+1)*Din_l)
            h_cat = diffusion_cat(h)                    # (N, (K+1)*U)

            # Shared x-side contribution for BOTH graph convolutions (3U out).
            x_contrib = wmat(x_cat, wx_all) + b_all[...]

            ru = jax.nn.sigmoid(x_contrib[:, :2 * U] + wmat(h_cat, wh_ru))
            r = ru[:, :U]
            u = ru[:, U:]

            rh_cat = diffusion_cat(r * h)               # diffusion of r*h
            c = jnp.tanh(x_contrib[:, 2 * U:] + wmat(rh_cat, wh_c))

            h_new = u * h + (1.0 - u) * c               # (N, U), f32
            hs_ref[layer] = h_new                       # natural layout store
            inp = h_new                                 # feeds next layer

    return kernel


# ---------------------------------------------------------------------------
# Wrappers (plain-JAX glue around the single fused kernel)
# ---------------------------------------------------------------------------
def random_walk_support_T(adj):
    """rownorm(adj + I) transposed (tiny plain-JAX glue op)."""
    n = adj.shape[0]
    a = adj + jnp.eye(n, dtype=adj.dtype)
    d = jnp.sum(a, axis=1)
    d_inv = jnp.where(d > 0, 1.0 / d, 0.0)
    return (d_inv[:, None] * a).T


def _pack_layer_weights(p, din, units, K):
    """Split the k-major concatenated weights into x/h halves and pack the two
    x-side weights along the output axis so x is matmul'd only once."""
    D = din + units

    def split(w):
        wx = jnp.concatenate([w[k * D: k * D + din] for k in range(K + 1)], 0)
        wh = jnp.concatenate([w[k * D + din: (k + 1) * D] for k in range(K + 1)], 0)
        return wx, wh

    wx_ru, wh_ru = split(p["w_ru"])
    wx_c, wh_c = split(p["w_c"])
    wx_all = jnp.concatenate([wx_ru, wx_c], axis=1)             # ((K+1)*Din, 3U)
    b_all = jnp.concatenate([p["b_ru"], p["b_c"]], axis=1)      # (1, 3U)
    return [wx_all.astype(jnp.bfloat16), wh_ru.astype(jnp.bfloat16),
            wh_c.astype(jnp.bfloat16), b_all.astype(jnp.float32)]


def encoder_forward(inputs, adj_mx, nodevec1, nodevec2, layer_params,
                    hidden_state=None, *, num_nodes, units, K, num_layers):
    del nodevec1, nodevec2  # accepted but unused, as in the torch forward
    B = inputs.shape[0]
    N, U = num_nodes, units
    din = inputs.shape[1] // N
    if hidden_state is None:
        hidden_state = jnp.zeros((num_layers, B, N * U), jnp.float32)

    adj_T = random_walk_support_T(adj_mx.astype(jnp.float32)).astype(jnp.bfloat16)

    x = inputs.astype(jnp.float32).reshape(B, N, din)
    h = hidden_state.astype(jnp.float32).reshape(num_layers, B, N, U)

    flat_w = []
    d_l = din
    for layer in range(num_layers):
        flat_w += _pack_layer_weights(layer_params[layer], d_l, U, K)
        d_l = U

    kernel = make_encoder_kernel(num_layers, K, U)

    in_specs = [
        # per-batch input block (batch dim squeezed)
        pl.BlockSpec((None, N, din), lambda b: (b, 0, 0)),
        # per-batch hidden-state block for all layers
        pl.BlockSpec((num_layers, None, N, U), lambda b: (0, b, 0, 0)),
        # support matrix: resident (same block every step -> no re-DMA)
        pl.BlockSpec((N, N), lambda b: (0, 0)),
    ]
    for w in flat_w:                                   # all weights resident
        in_specs.append(pl.BlockSpec(w.shape, lambda b: (0, 0)))

    hs = pl.pallas_call(
        kernel,
        out_shape=jax.ShapeDtypeStruct((num_layers, B, N, U), jnp.float32),
        grid=(B,),
        in_specs=in_specs,
        out_specs=pl.BlockSpec((num_layers, None, N, U),
                               lambda b: (0, b, 0, 0)),
        compiler_params=pltpu.CompilerParams(
            dimension_semantics=("parallel",)),
    )(x, h, adj_T, *flat_w)

    # Contiguous flatten of the trailing dims (metadata-only, outside kernel).
    hs = hs.reshape(num_layers, B, N * U)
    # torch returns (output, stack(hidden_states)); output == last hidden state
    return hs[-1], hs


# ---------------------------------------------------------------------------
# Pure-JAX f32 reference (same math, no Pallas) used for a correctness check.
# ---------------------------------------------------------------------------
def _dcgru_cell_ref(x_flat, h_flat, adj_T, p, *, num_nodes, units, K):
    B = x_flat.shape[0]
    x = x_flat.reshape(B, num_nodes, -1)
    h = h_flat.reshape(B, num_nodes, units)

    def gconv(state, w, b):
        xs = jnp.concatenate([x, state], axis=-1)
        terms = [xs]
        if K >= 1:
            x0 = xs
            x1 = jnp.einsum("nm,bmd->bnd", adj_T, x0)
            terms.append(x1)
            for _ in range(2, K + 1):
                x2 = 2.0 * jnp.einsum("nm,bmd->bnd", adj_T, x1) - x0
                terms.append(x2)
                x0, x1 = x1, x2
        feat = jnp.concatenate(terms, axis=-1)
        return jnp.einsum("bnf,fo->bno", feat, w) + b

    ru = jax.nn.sigmoid(gconv(h, p["w_ru"], p["b_ru"]))
    r, u = ru[..., :units], ru[..., units:]
    c = jnp.tanh(gconv(r * h, p["w_c"], p["b_c"]))
    hn = u * h + (1.0 - u) * c
    return hn.reshape(B, num_nodes * units)


def encoder_forward_ref(inputs, adj_mx, layer_params, *, num_nodes, units, K,
                        num_layers):
    B = inputs.shape[0]
    hidden_state = jnp.zeros((num_layers, B, num_nodes * units), jnp.float32)
    adj_T = random_walk_support_T(adj_mx.astype(jnp.float32))
    hidden_states = []
    output = inputs
    for layer in range(num_layers):
        output = _dcgru_cell_ref(output, hidden_state[layer], adj_T,
                                 layer_params[layer],
                                 num_nodes=num_nodes, units=units, K=K)
        hidden_states.append(output)
    return output, jnp.stack(hidden_states)


# ---------------------------------------------------------------------------
# Deterministic parameter construction + demo run
# ---------------------------------------------------------------------------
def init_layer_params(key, din, units, K):
    d_total = (din + units) * (K + 1)
    k1, k2 = jax.random.split(key)
    scale = 1.0 / jnp.sqrt(jnp.float32(d_total))
    return {
        "w_ru": jax.random.normal(k1, (d_total, 2 * units), jnp.float32) * scale,
        "b_ru": jnp.full((1, 2 * units), 1.0, jnp.float32),  # bias_start=1.0
        "w_c": jax.random.normal(k2, (d_total, units), jnp.float32) * scale,
        "b_c": jnp.zeros((1, units), jnp.float32),            # bias_start=0.0
    }


if __name__ == "__main__":
    # Model hyperparameters (small, consistent with the module's __init__).
    num_nodes = 16
    rnn_units = 32
    input_dim = 2
    max_diffusion_step = 2
    num_rnn_layers = 2
    batch = 2
    emb_dim = 10  # for the (unused) adaptive-adjacency node embeddings

    key = jax.random.PRNGKey(0)
    k_in, k_adj, k_n1, k_n2, k_p0, k_p1 = jax.random.split(key, 6)

    inputs = jax.random.normal(k_in, (batch, num_nodes * input_dim),
                               jnp.float32)
    adj_mx = jax.random.uniform(k_adj, (num_nodes, num_nodes), jnp.float32)
    nodevec1 = jax.random.normal(k_n1, (num_nodes, emb_dim), jnp.float32)
    nodevec2 = jax.random.normal(k_n2, (num_nodes, emb_dim), jnp.float32)

    # Layer 0 sees input_dim features per node; deeper layers see rnn_units.
    layer_params = [
        init_layer_params(k_p0, input_dim, rnn_units, max_diffusion_step),
        init_layer_params(k_p1, rnn_units, rnn_units, max_diffusion_step),
    ][:num_rnn_layers]

    output, hidden_states = encoder_forward(
        inputs, adj_mx, nodevec1, nodevec2, layer_params,
        hidden_state=None, num_nodes=num_nodes, units=rnn_units,
        K=max_diffusion_step, num_layers=num_rnn_layers)
    output = jax.block_until_ready(output)
    hidden_states = jax.block_until_ready(hidden_states)

    assert output.shape == (batch, num_nodes * rnn_units)
    assert hidden_states.shape == (num_rnn_layers, batch,
                                   num_nodes * rnn_units)

    # Cross-check the fused Pallas kernel (bf16 MXU operands, f32 accumulate)
    # against a pure-JAX f32 reference.
    out_ref, hs_ref = encoder_forward_ref(
        inputs, adj_mx, layer_params, num_nodes=num_nodes, units=rnn_units,
        K=max_diffusion_step, num_layers=num_rnn_layers)
    assert jnp.allclose(output, out_ref, atol=2e-2, rtol=2e-2)
    assert jnp.allclose(hidden_states, hs_ref, atol=2e-2, rtol=2e-2)

    print("KERNEL_OK")
</pallas_src>

<mosaic_0001>
module attributes {stable_mosaic.version = 11 : i64} {
  func.func @kernel(%arg0: i32, %arg1: memref<1x16x2xf32, #tpu.memory_space<vmem>>, %arg2: memref<2x1x16x32xf32, #tpu.memory_space<vmem>>, %arg3: memref<16x16xbf16, #tpu.memory_space<vmem>>, %arg4: memref<6x96xbf16, #tpu.memory_space<vmem>>, %arg5: memref<96x64xbf16, #tpu.memory_space<vmem>>, %arg6: memref<96x32xbf16, #tpu.memory_space<vmem>>, %arg7: memref<1x96xf32, #tpu.memory_space<vmem>>, %arg8: memref<96x96xbf16, #tpu.memory_space<vmem>>, %arg9: memref<96x64xbf16, #tpu.memory_space<vmem>>, %arg10: memref<96x32xbf16, #tpu.memory_space<vmem>>, %arg11: memref<1x96xf32, #tpu.memory_space<vmem>>, %arg12: memref<2x1x16x32xf32, #tpu.memory_space<vmem>>) attributes {dimension_semantics = [#tpu.dimension_semantics<parallel>], iteration_bounds = array<i64: 2>, scalar_prefetch = 0 : i64, scratch_operands = 0 : i64, tpu.core_type = #tpu.core_type<tc>, window_params = [{transform_indices = @transform_0, window_bounds = array<i64: 1, 16, 2>}, {transform_indices = @transform_1, window_bounds = array<i64: 2, 1, 16, 32>}, {pipeline_mode = #tpu.pipeline_mode<synchronous>, transform_indices = @transform_2, window_bounds = array<i64: 16, 16>}, {pipeline_mode = #tpu.pipeline_mode<synchronous>, transform_indices = @transform_3, window_bounds = array<i64: 6, 96>}, {pipeline_mode = #tpu.pipeline_mode<synchronous>, transform_indices = @transform_4, window_bounds = array<i64: 96, 64>}, {pipeline_mode = #tpu.pipeline_mode<synchronous>, transform_indices = @transform_5, window_bounds = array<i64: 96, 32>}, {pipeline_mode = #tpu.pipeline_mode<synchronous>, transform_indices = @transform_6, window_bounds = array<i64: 1, 96>}, {pipeline_mode = #tpu.pipeline_mode<synchronous>, transform_indices = @transform_7, window_bounds = array<i64: 96, 96>}, {pipeline_mode = #tpu.pipeline_mode<synchronous>, transform_indices = @transform_8, window_bounds = array<i64: 96, 64>}, {pipeline_mode = #tpu.pipeline_mode<synchronous>, transform_indices = @transform_9, window_bounds = array<i64: 96, 32>}, {pipeline_mode = #tpu.pipeline_mode<synchronous>, transform_indices = @transform_10, window_bounds = array<i64: 1, 96>}, {transform_indices = @transform_11, window_bounds = array<i64: 2, 1, 16, 32>}]} {
    %c0 = arith.constant 0 : index
    %c0_0 = arith.constant 0 : index
    %0 = vector.load %arg3[%c0, %c0_0] : memref<16x16xbf16, #tpu.memory_space<vmem>>, vector<16x16xbf16>
    %c0_1 = arith.constant 0 : index
    %c0_2 = arith.constant 0 : index
    %c0_3 = arith.constant 0 : index
    %1 = vector.load %arg1[%c0_1, %c0_2, %c0_3] : memref<1x16x2xf32, #tpu.memory_space<vmem>>, vector<1x16x2xf32>
    %2 = vector.shape_cast %1 : vector<1x16x2xf32> to vector<16x2xf32>
    %c0_4 = arith.constant 0 : index
    %c0_5 = arith.constant 0 : index
    %c0_6 = arith.constant 0 : index
    %c0_7 = arith.constant 0 : index
    %3 = vector.load %arg2[%c0_4, %c0_5, %c0_6, %c0_7] : memref<2x1x16x32xf32, #tpu.memory_space<vmem>>, vector<1x1x16x32xf32>
    %4 = vector.shape_cast %3 : vector<1x1x16x32xf32> to vector<16x32xf32>
    %5 = arith.truncf %2 : vector<16x2xf32> to vector<16x2xbf16>
    %cst = arith.constant dense<0.000000e+00> : vector<16x2xf32>
    %6 = tpu.matmul %0, %5, %cst {dimension_numbers = #tpu.dot_dimension_numbers<[1], [0], [0], [1], [0, 0, 1, 1], [], []>} : vector<16x16xbf16>, vector<16x2xbf16>, vector<16x2xf32> -> vector<16x2xf32>
    %7 = arith.truncf %6 : vector<16x2xf32> to vector<16x2xbf16>
    %cst_8 = arith.constant dense<0.000000e+00> : vector<16x2xf32>
    %8 = tpu.matmul %0, %7, %cst_8 {dimension_numbers = #tpu.dot_dimension_numbers<[1], [0], [0], [1], [0, 0, 1, 1], [], []>} : vector<16x16xbf16>, vector<16x2xbf16>, vector<16x2xf32> -> vector<16x2xf32>
    %cst_9 = arith.constant 2.000000e+00 : f32
    %9 = vector.broadcast %cst_9 : f32 to vector<16x2xf32>
    %10 = arith.mulf %9, %8 : vector<16x2xf32>
    %11 = arith.subf %10, %2 : vector<16x2xf32>
    %12 = tpu.concatenate %2, %6, %11 in 1 : vector<16x2xf32>, vector<16x2xf32>, vector<16x2xf32> -> vector<16x6xf32>
    %13 = arith.truncf %4 : vector<16x32xf32> to vector<16x32xbf16>
    %cst_10 = arith.constant dense<0.000000e+00> : vector<16x32xf32>
    %14 = tpu.matmul %0, %13, %cst_10 {dimension_numbers = #tpu.dot_dimension_numbers<[1], [0], [0], [1], [0, 0, 1, 1], [], []>} : vector<16x16xbf16>, vector<16x32xbf16>, vector<16x32xf32> -> vector<16x32xf32>
    %15 = arith.truncf %14 : vector<16x32xf32> to vector<16x32xbf16>
    %cst_11 = arith.constant dense<0.000000e+00> : vector<16x32xf32>
    %16 = tpu.matmul %0, %15, %cst_11 {dimension_numbers = #tpu.dot_dimension_numbers<[1], [0], [0], [1], [0, 0, 1, 1], [], []>} : vector<16x16xbf16>, vector<16x32xbf16>, vector<16x32xf32> -> vector<16x32xf32>
    %cst_12 = arith.constant 2.000000e+00 : f32
    %17 = vector.broadcast %cst_12 : f32 to vector<16x32xf32>
    %18 = arith.mulf %17, %16 : vector<16x32xf32>
    %19 = arith.subf %18, %4 : vector<16x32xf32>
    %20 = tpu.concatenate %4, %14, %19 in 1 : vector<16x32xf32>, vector<16x32xf32>, vector<16x32xf32> -> vector<16x96xf32>
    %21 = arith.truncf %12 : vector<16x6xf32> to vector<16x6xbf16>
    %c0_13 = arith.constant 0 : index
    %c0_14 = arith.constant 0 : index
    %22 = vector.load %arg4[%c0_13, %c0_14] : memref<6x96xbf16, #tpu.memory_space<vmem>>, vector<6x96xbf16>
    %cst_15 = arith.constant dense<0.000000e+00> : vector<16x96xf32>
    %23 = tpu.matmul %21, %22, %cst_15 {dimension_numbers = #tpu.dot_dimension_numbers<[1], [0], [0], [1], [0, 0, 1, 1], [], []>} : vector<16x6xbf16>, vector<6x96xbf16>, vector<16x96xf32> -> vector<16x96xf32>
    %c0_16 = arith.constant 0 : index
    %c0_17 = arith.constant 0 : index
    %24 = vector.load %arg7[%c0_16, %c0_17] : memref<1x96xf32, #tpu.memory_space<vmem>>, vector<1x96xf32>
    %25 = vector.broadcast %24 : vector<1x96xf32> to vector<16x96xf32>
    %26 = arith.addf %23, %25 : vector<16x96xf32>
    %27 = vector.extract_strided_slice %26 {offsets = [0, 0], sizes = [16, 64], strides = [1, 1]} : vector<16x96xf32> to vector<16x64xf32>
    %28 = arith.truncf %20 : vector<16x96xf32> to vector<16x96xbf16>
    %c0_18 = arith.constant 0 : index
    %c0_19 = arith.constant 0 : index
    %29 = vector.load %arg5[%c0_18, %c0_19] : memref<96x64xbf16, #tpu.memory_space<vmem>>, vector<96x64xbf16>
    %cst_20 = arith.constant dense<0.000000e+00> : vector<16x64xf32>
    %30 = tpu.matmul %28, %29, %cst_20 {dimension_numbers = #tpu.dot_dimension_numbers<[1], [0], [0], [1], [0, 0, 1, 1], [], []>} : vector<16x96xbf16>, vector<96x64xbf16>, vector<16x64xf32> -> vector<16x64xf32>
    %31 = arith.addf %27, %30 : vector<16x64xf32>
    %32 = arith.negf %31 : vector<16x64xf32>
    %33 = math.exp %32 : vector<16x64xf32>
    %cst_21 = arith.constant 1.000000e+00 : f32
    %34 = vector.broadcast %cst_21 : f32 to vector<16x64xf32>
    %35 = arith.addf %34, %33 : vector<16x64xf32>
    %36 = arith.divf %34, %35 : vector<16x64xf32>
    %37 = vector.extract_strided_slice %36 {offsets = [0, 0], sizes = [16, 32], strides = [1, 1]} : vector<16x64xf32> to vector<16x32xf32>
    %38 = vector.extract_strided_slice %36 {offsets = [0, 32], sizes = [16, 32], strides = [1, 1]} : vector<16x64xf32> to vector<16x32xf32>
    %39 = arith.mulf %37, %4 : vector<16x32xf32>
    %40 = arith.truncf %39 : vector<16x32xf32> to vector<16x32xbf16>
    %cst_22 = arith.constant dense<0.000000e+00> : vector<16x32xf32>
    %41 = tpu.matmul %0, %40, %cst_22 {dimension_numbers = #tpu.dot_dimension_numbers<[1], [0], [0], [1], [0, 0, 1, 1], [], []>} : vector<16x16xbf16>, vector<16x32xbf16>, vector<16x32xf32> -> vector<16x32xf32>
    %42 = arith.truncf %41 : vector<16x32xf32> to vector<16x32xbf16>
    %cst_23 = arith.constant dense<0.000000e+00> : vector<16x32xf32>
    %43 = tpu.matmul %0, %42, %cst_23 {dimension_numbers = #tpu.dot_dimension_numbers<[1], [0], [0], [1], [0, 0, 1, 1], [], []>} : vector<16x16xbf16>, vector<16x32xbf16>, vector<16x32xf32> -> vector<16x32xf32>
    %cst_24 = arith.constant 2.000000e+00 : f32
    %44 = vector.broadcast %cst_24 : f32 to vector<16x32xf32>
    %45 = arith.mulf %44, %43 : vector<16x32xf32>
    %46 = arith.subf %45, %39 : vector<16x32xf32>
    %47 = tpu.concatenate %39, %41, %46 in 1 : vector<16x32xf32>, vector<16x32xf32>, vector<16x32xf32> -> vector<16x96xf32>
    %48 = vector.extract_strided_slice %26 {offsets = [0, 64], sizes = [16, 32], strides = [1, 1]} : vector<16x96xf32> to vector<16x32xf32>
    %49 = arith.truncf %47 : vector<16x96xf32> to vector<16x96xbf16>
    %c0_25 = arith.constant 0 : index
    %c0_26 = arith.constant 0 : index
    %50 = vector.load %arg6[%c0_25, %c0_26] : memref<96x32xbf16, #tpu.memory_space<vmem>>, vector<96x32xbf16>
    %cst_27 = arith.constant dense<0.000000e+00> : vector<16x32xf32>
    %51 = tpu.matmul %49, %50, %cst_27 {dimension_numbers = #tpu.dot_dimension_numbers<[1], [0], [0], [1], [0, 0, 1, 1], [], []>} : vector<16x96xbf16>, vector<96x32xbf16>, vector<16x32xf32> -> vector<16x32xf32>
    %52 = arith.addf %48, %51 : vector<16x32xf32>
    %53 = math.tanh %52 : vector<16x32xf32>
    %54 = arith.mulf %38, %4 : vector<16x32xf32>
    %cst_28 = arith.constant 1.000000e+00 : f32
    %55 = vector.broadcast %cst_28 : f32 to vector<16x32xf32>
    %56 = arith.subf %55, %38 : vector<16x32xf32>
    %57 = arith.mulf %56, %53 : vector<16x32xf32>
    %58 = arith.addf %54, %57 : vector<16x32xf32>
    %c0_29 = arith.constant 0 : index
    %c0_30 = arith.constant 0 : index
    %c0_31 = arith.constant 0 : index
    %c0_32 = arith.constant 0 : index
    %59 = vector.load %arg12[%c0_29, %c0_30, %c0_31, %c0_32] : memref<2x1x16x32xf32, #tpu.memory_space<vmem>>, vector<1x1x16x32xf32>
    %60 = vector.shape_cast %59 : vector<1x1x16x32xf32> to vector<16x32xf32>
    %61 = vector.shape_cast %58 : vector<16x32xf32> to vector<1x1x16x32xf32>
    tpu.vector_store %arg12[%c0_29, %c0_30, %c0_31, %c0_32], %61 {strides = array<i32>} : memref<2x1x16x32xf32, #tpu.memory_space<vmem>>, vector<1x1x16x32xf32>,
    %c1 = arith.constant 1 : index
    %c0_33 = arith.constant 0 : index
    %c0_34 = arith.constant 0 : index
    %c0_35 = arith.constant 0 : index
    %62 = vector.load %arg2[%c1, %c0_33, %c0_34, %c0_35] : memref<2x1x16x32xf32, #tpu.memory_space<vmem>>, vector<1x1x16x32xf32>
    %63 = vector.shape_cast %62 : vector<1x1x16x32xf32> to vector<16x32xf32>
    %64 = arith.truncf %58 : vector<16x32xf32> to vector<16x32xbf16>
    %cst_36 = arith.constant dense<0.000000e+00> : vector<16x32xf32>
    %65 = tpu.matmul %0, %64, %cst_36 {dimension_numbers = #tpu.dot_dimension_numbers<[1], [0], [0], [1], [0, 0, 1, 1], [], []>} : vector<16x16xbf16>, vector<16x32xbf16>, vector<16x32xf32> -> vector<16x32xf32>
    %66 = arith.truncf %65 : vector<16x32xf32> to vector<16x32xbf16>
    %cst_37 = arith.constant dense<0.000000e+00> : vector<16x32xf32>
    %67 = tpu.matmul %0, %66, %cst_37 {dimension_numbers = #tpu.dot_dimension_numbers<[1], [0], [0], [1], [0, 0, 1, 1], [], []>} : vector<16x16xbf16>, vector<16x32xbf16>, vector<16x32xf32> -> vector<16x32xf32>
    %cst_38 = arith.constant 2.000000e+00 : f32
    %68 = vector.broadcast %cst_38 : f32 to vector<16x32xf32>
    %69 = arith.mulf %68, %67 : vector<16x32xf32>
    %70 = arith.subf %69, %58 : vector<16x32xf32>
    %71 = tpu.concatenate %58, %65, %70 in 1 : vector<16x32xf32>, vector<16x32xf32>, vector<16x32xf32> -> vector<16x96xf32>
    %72 = arith.truncf %63 : vector<16x32xf32> to vector<16x32xbf16>
    %cst_39 = arith.constant dense<0.000000e+00> : vector<16x32xf32>
    %73 = tpu.matmul %0, %72, %cst_39 {dimension_numbers = #tpu.dot_dimension_numbers<[1], [0], [0], [1], [0, 0, 1, 1], [], []>} : vector<16x16xbf16>, vector<16x32xbf16>, vector<16x32xf32> -> vector<16x32xf32>
    %74 = arith.truncf %73 : vector<16x32xf32> to vector<16x32xbf16>
    %cst_40 = arith.constant dense<0.000000e+00> : vector<16x32xf32>
    %75 = tpu.matmul %0, %74, %cst_40 {dimension_numbers = #tpu.dot_dimension_numbers<[1], [0], [0], [1], [0, 0, 1, 1], [], []>} : vector<16x16xbf16>, vector<16x32xbf16>, vector<16x32xf32> -> vector<16x32xf32>
    %cst_41 = arith.constant 2.000000e+00 : f32
    %76 = vector.broadcast %cst_41 : f32 to vector<16x32xf32>
    %77 = arith.mulf %76, %75 : vector<16x32xf32>
    %78 = arith.subf %77, %63 : vector<16x32xf32>
    %79 = tpu.concatenate %63, %73, %78 in 1 : vector<16x32xf32>, vector<16x32xf32>, vector<16x32xf32> -> vector<16x96xf32>
    %80 = arith.truncf %71 : vector<16x96xf32> to vector<16x96xbf16>
    %c0_42 = arith.constant 0 : index
    %c0_43 = arith.constant 0 : index
    %81 = vector.load %arg8[%c0_42, %c0_43] : memref<96x96xbf16, #tpu.memory_space<vmem>>, vector<96x96xbf16>
    %cst_44 = arith.constant dense<0.000000e+00> : vector<16x96xf32>
    %82 = tpu.matmul %80, %81, %cst_44 {dimension_numbers = #tpu.dot_dimension_numbers<[1], [0], [0], [1], [0, 0, 1, 1], [], []>} : vector<16x96xbf16>, vector<96x96xbf16>, vector<16x96xf32> -> vector<16x96xf32>
    %c0_45 = arith.constant 0 : index
    %c0_46 = arith.constant 0 : index
    %83 = vector.load %arg11[%c0_45, %c0_46] : memref<1x96xf32, #tpu.memory_space<vmem>>, vector<1x96xf32>
    %84 = vector.broadcast %83 : vector<1x96xf32> to vector<16x96xf32>
    %85 = arith.addf %82, %84 : vector<16x96xf32>
    %86 = vector.extract_strided_slice %85 {offsets = [0, 0], sizes = [16, 64], strides = [1, 1]} : vector<16x96xf32> to vector<16x64xf32>
    %87 = arith.truncf %79 : vector<16x96xf32> to vector<16x96xbf16>
    %c0_47 = arith.constant 0 : index
    %c0_48 = arith.constant 0 : index
    %88 = vector.load %arg9[%c0_47, %c0_48] : memref<96x64xbf16, #tpu.memory_space<vmem>>, vector<96x64xbf16>
    %cst_49 = arith.constant dense<0.000000e+00> : vector<16x64xf32>
    %89 = tpu.matmul %87, %88, %cst_49 {dimension_numbers = #tpu.dot_dimension_numbers<[1], [0], [0], [1], [0, 0, 1, 1], [], []>} : vector<16x96xbf16>, vector<96x64xbf16>, vector<16x64xf32> -> vector<16x64xf32>
    %90 = arith.addf %86, %89 : vector<16x64xf32>
    %91 = arith.negf %90 : vector<16x64xf32>
    %92 = math.exp %91 : vector<16x64xf32>
    %cst_50 = arith.constant 1.000000e+00 : f32
    %93 = vector.broadcast %cst_50 : f32 to vector<16x64xf32>
    %94 = arith.addf %93, %92 : vector<16x64xf32>
    %95 = arith.divf %93, %94 : vector<16x64xf32>
    %96 = vector.extract_strided_slice %95 {offsets = [0, 0], sizes = [16, 32], strides = [1, 1]} : vector<16x64xf32> to vector<16x32xf32>
    %97 = vector.extract_strided_slice %95 {offsets = [0, 32], sizes = [16, 32], strides = [1, 1]} : vector<16x64xf32> to vector<16x32xf32>
    %98 = arith.mulf %96, %63 : vector<16x32xf32>
    %99 = arith.truncf %98 : vector<16x32xf32> to vector<16x32xbf16>
    %cst_51 = arith.constant dense<0.000000e+00> : vector<16x32xf32>
    %100 = tpu.matmul %0, %99, %cst_51 {dimension_numbers = #tpu.dot_dimension_numbers<[1], [0], [0], [1], [0, 0, 1, 1], [], []>} : vector<16x16xbf16>, vector<16x32xbf16>, vector<16x32xf32> -> vector<16x32xf32>
    %101 = arith.truncf %100 : vector<16x32xf32> to vector<16x32xbf16>
    %cst_52 = arith.constant dense<0.000000e+00> : vector<16x32xf32>
    %102 = tpu.matmul %0, %101, %cst_52 {dimension_numbers = #tpu.dot_dimension_numbers<[1], [0], [0], [1], [0, 0, 1, 1], [], []>} : vector<16x16xbf16>, vector<16x32xbf16>, vector<16x32xf32> -> vector<16x32xf32>
    %cst_53 = arith.constant 2.000000e+00 : f32
    %103 = vector.broadcast %cst_53 : f32 to vector<16x32xf32>
    %104 = arith.mulf %103, %102 : vector<16x32xf32>
    %105 = arith.subf %104, %98 : vector<16x32xf32>
    %106 = tpu.concatenate %98, %100, %105 in 1 : vector<16x32xf32>, vector<16x32xf32>, vector<16x32xf32> -> vector<16x96xf32>
    %107 = vector.extract_strided_slice %85 {offsets = [0, 64], sizes = [16, 32], strides = [1, 1]} : vector<16x96xf32> to vector<16x32xf32>
    %108 = arith.truncf %106 : vector<16x96xf32> to vector<16x96xbf16>
    %c0_54 = arith.constant 0 : index
    %c0_55 = arith.constant 0 : index
    %109 = vector.load %arg10[%c0_54, %c0_55] : memref<96x32xbf16, #tpu.memory_space<vmem>>, vector<96x32xbf16>
    %cst_56 = arith.constant dense<0.000000e+00> : vector<16x32xf32>
    %110 = tpu.matmul %108, %109, %cst_56 {dimension_numbers = #tpu.dot_dimension_numbers<[1], [0], [0], [1], [0, 0, 1, 1], [], []>} : vector<16x96xbf16>, vector<96x32xbf16>, vector<16x32xf32> -> vector<16x32xf32>
    %111 = arith.addf %107, %110 : vector<16x32xf32>
    %112 = math.tanh %111 : vector<16x32xf32>
    %113 = arith.mulf %97, %63 : vector<16x32xf32>
    %cst_57 = arith.constant 1.000000e+00 : f32
    %114 = vector.broadcast %cst_57 : f32 to vector<16x32xf32>
    %115 = arith.subf %114, %97 : vector<16x32xf32>
    %116 = arith.mulf %115, %112 : vector<16x32xf32>
    %117 = arith.addf %113, %116 : vector<16x32xf32>
    %c1_58 = arith.constant 1 : index
    %c0_59 = arith.constant 0 : index
    %c0_60 = arith.constant 0 : index
    %c0_61 = arith.constant 0 : index
    %118 = vector.load %arg12[%c1_58, %c0_59, %c0_60, %c0_61] : memref<2x1x16x32xf32, #tpu.memory_space<vmem>>, vector<1x1x16x32xf32>
    %119 = vector.shape_cast %118 : vector<1x1x16x32xf32> to vector<16x32xf32>
    %120 = vector.shape_cast %117 : vector<16x32xf32> to vector<1x1x16x32xf32>
    tpu.vector_store %arg12[%c1_58, %c0_59, %c0_60, %c0_61], %120 {strides = array<i32>} : memref<2x1x16x32xf32, #tpu.memory_space<vmem>>, vector<1x1x16x32xf32>,
    return
  }
  func.func @transform_0(%arg0: i32) -> (i32, i32, i32) {
    %c0_i32 = arith.constant 0 : i32
    %c0_i32_0 = arith.constant 0 : i32
    %c0_i32_1 = arith.constant 0 : i32
    return %arg0, %c0_i32, %c0_i32_0 : i32, i32, i32
  }
  func.func @transform_1(%arg0: i32) -> (i32, i32, i32, i32) {
    %c0_i32 = arith.constant 0 : i32
    %c0_i32_0 = arith.constant 0 : i32
    %c0_i32_1 = arith.constant 0 : i32
    %c0_i32_2 = arith.constant 0 : i32
    return %c0_i32, %arg0, %c0_i32_0, %c0_i32_1 : i32, i32, i32, i32
  }
  func.func @transform_2(%arg0: i32) -> (i32, i32) {
    %c0_i32 = arith.constant 0 : i32
    %c0_i32_0 = arith.constant 0 : i32
    %c0_i32_1 = arith.constant 0 : i32
    return %c0_i32, %c0_i32_0 : i32, i32
  }
  func.func @transform_3(%arg0: i32) -> (i32, i32) {
    %c0_i32 = arith.constant 0 : i32
    %c0_i32_0 = arith.constant 0 : i32
    %c0_i32_1 = arith.constant 0 : i32
    return %c0_i32, %c0_i32_0 : i32, i32
  }
  func.func @transform_4(%arg0: i32) -> (i32, i32) {
    %c0_i32 = arith.constant 0 : i32
    %c0_i32_0 = arith.constant 0 : i32
    %c0_i32_1 = arith.constant 0 : i32
    return %c0_i32, %c0_i32_0 : i32, i32
  }
  func.func @transform_5(%arg0: i32) -> (i32, i32) {
    %c0_i32 = arith.constant 0 : i32
    %c0_i32_0 = arith.constant 0 : i32
    %c0_i32_1 = arith.constant 0 : i32
    return %c0_i32, %c0_i32_0 : i32, i32
  }
  func.func @transform_6(%arg0: i32) -> (i32, i32) {
    %c0_i32 = arith.constant 0 : i32
    %c0_i32_0 = arith.constant 0 : i32
    %c0_i32_1 = arith.constant 0 : i32
    return %c0_i32, %c0_i32_0 : i32, i32
  }
  func.func @transform_7(%arg0: i32) -> (i32, i32) {
    %c0_i32 = arith.constant 0 : i32
    %c0_i32_0 = arith.constant 0 : i32
    %c0_i32_1 = arith.constant 0 : i32
    return %c0_i32, %c0_i32_0 : i32, i32
  }
  func.func @transform_8(%arg0: i32) -> (i32, i32) {
    %c0_i32 = arith.constant 0 : i32
    %c0_i32_0 = arith.constant 0 : i32
    %c0_i32_1 = arith.constant 0 : i32
    return %c0_i32, %c0_i32_0 : i32, i32
  }
  func.func @transform_9(%arg0: i32) -> (i32, i32) {
    %c0_i32 = arith.constant 0 : i32
    %c0_i32_0 = arith.constant 0 : i32
    %c0_i32_1 = arith.constant 0 : i32
    return %c0_i32, %c0_i32_0 : i32, i32
  }
  func.func @transform_10(%arg0: i32) -> (i32, i32) {
    %c0_i32 = arith.constant 0 : i32
    %c0_i32_0 = arith.constant 0 : i32
    %c0_i32_1 = arith.constant 0 : i32
    return %c0_i32, %c0_i32_0 : i32, i32
  }
  func.func @transform_11(%arg0: i32) -> (i32, i32, i32, i32) {
    %c0_i32 = arith.constant 0 : i32
    %c0_i32_0 = arith.constant 0 : i32
    %c0_i32_1 = arith.constant 0 : i32
    %c0_i32_2 = arith.constant 0 : i32
    return %c0_i32, %arg0, %c0_i32_0, %c0_i32_1 : i32, i32, i32, i32
  }
}

</mosaic_0001>

<bundles_post_ra>
// kernel: tpu_custom_call.1
= control target key start
LH: loop header
LB: loop body
LE: loop exit
PB: predicated region body
PF: predicated region fallthrough
CT: control target
= control target key end

     0   :  { %s2954_s0 = inlined_call_operand.vmem [shape: f32[2,16,2], index: 0, kind: input, shape index: {}]   ;;  %s2955_s1 = inlined_call_operand.vmem [shape: f32[2,2,16,32], index: 1, kind: input, shape index: {}]   ;;  %s2956_s2 = inlined_call_operand.vmem [shape: bf16[16,16], index: 2, kind: input, shape index: {}]   ;;  %s2957_s3 = inlined_call_operand.vmem [shape: bf16[6,96], index: 3, kind: input, shape index: {}]   ;;  %s2958_s4 = inlined_call_operand.vmem [shape: bf16[96,64], index: 4, kind: input, shape index: {}]   ;;  %s2959_s5 = inlined_call_operand.vmem [shape: bf16[96,32], index: 5, kind: input, shape index: {}]   ;;  %s2960_s6 = inlined_call_operand.vmem [shape: f32[1,96], index: 6, kind: input, shape index: {}]   ;;  %s2961_s7 = inlined_call_operand.vmem [shape: bf16[96,96], index: 7, kind: input, shape index: {}]   ;;  %s2962_s8 = inlined_call_operand.vmem [shape: bf16[96,64], index: 8, kind: input, shape index: {}]   ;;  %s2963_s9 = inlined_call_operand.vmem [shape: bf16[96,32], index: 9, kind: input, shape index: {}]   ;;  %s2964_s10 = inlined_call_operand.vmem [shape: f32[1,96], index: 10, kind: input, shape index: {}]   ;;  %s2965_s11 = inlined_call_operand.hbm [shape: f32[2,2,16,32], index: 11, kind: output, shape index: {}]  }
   0x1   :  { %2973 = sst [smem:[#allocation8_spill]] %s2954_s0 }
   0x2   :  { %16 = vsyncpa [#allocation4], 0 }
   0x3   :  { %18 = vsyncpa [#allocation4 + $0x1], 0  ;;  %s2487_s17 = smov 0   ;;  %s2489_s18 = smov 0  }
   0x4   :  { %s2491_s19 = smov 0   ;;  %s2493_s20 = smov 0  }
   0x5 LB: > { %s2508_s21 = sadd.s32 4294967295, %s2411_s20   ;;  %s1906_s22 = sadd.s32 4294967294, %s2411_s20   ;;  %s2411_s20 = sphi %s2493_s20, %s2984_s20   ;;  %s2407_s19 = sphi %s2491_s19, %s2983_s19   ;;  %s2403_s18 = sphi %s2489_s18, %s2982_s18   ;;  %s2399_s17 = sphi %s2487_s17, %s2981_s17  }
   0x6   : > { %s2512_s23 = sadd.s32 1, %s2411_s20   ;;  %s57_s24 = sadd.s32 1, %s2407_s19 }
   0x7   : > { %s54_s25 = ssub.s32 %s2411_s20, %s2512_s23  ;;  %p64_p0 = scmp.ne.s32.totalorder %s2407_s19, %s2403_s18 }
   0x8   : > { %p55_p1 = scmp.eq.s32.totalorder %s54_s25, 0  ;;  %p65_p2 = scmp.eq.s32.totalorder %s2411_s20, 0 }
   0x9   : > { %p283_p3 = scmp.eq.s32.totalorder %s2508_s21, 1  ;;  %p288_p4 = scmp.ne.s32.totalorder %s2403_s18, %s2399_s17 }
   0xa   : > { %s2524_s26 = scalar_select %p55_p1, %s2407_s19, %s57_s24  }
   0xb   : > { %p66_p5 = por %p65_p2, %p64_p0  ;;  %p2526_p6 = por %p283_p3, %p64_p0 }
   0xc   : > { %p289_p7 = scmp.eq.s32.totalorder %s1906_s22, 1  ;;  %p1908_p9 = scmp.ge.s32.totalorder %s2411_s20, 2 }
   0xe   : > { %p2530_p8 = por %p289_p7, %p288_p4  ;;  %332 = sbr.rel (%p1908_p9) target bundleno = 28 (0x1c), region = 52 }
  0x15   : > { %343 = sbr.rel (!%p66_p5) target bundleno = 28 (0x1c), region = 60  ;;  %s345_s29 = sand.u32 (%p66_p5), 1, %s2407_s19  }
  0x16   : > { %s1981_s30 = sshll.u32 (%p66_p5), %s2411_s20, 4  ;;  %s1909_s12 = sshll.u32 (%p66_p5), %s345_s29, 5 }
  0x17   : > { %s350_s15 = scalar_lea.vmem (%p66_p5), %s2955_s1, %s1981_s30  ;;  %s347_s16 = scalar_lea.vmem (%p66_p5), [#allocation2], %s1909_s12 }
  0x18   : > { %v384_v0 = vld [vmem:[%s350_s15] sm:$0xff] (%p66_p5)  ;;  %v386_v1 = vld [vmem:[%s350_s15 + $0x8] sm:$0xff] (%p66_p5) }
  0x19   : > { %v388_v2 = vld [vmem:[%s350_s15 + $0x20] sm:$0xff] (%p66_p5)  ;;  %385 = vst [vmem:[%s347_s16] sm:$0xff] (%p66_p5), %v384_v0  ;;  %387 = vst [vmem:[%s347_s16 + $0x8] sm:$0xff] (%p66_p5), %v386_v1  ;;  %v390_v3 = vld [vmem:[%s350_s15 + $0x28] sm:$0xff] (%p66_p5) }
  0x1a   : > { %389 = vst [vmem:[%s347_s16 + $0x10] sm:$0xff] (%p66_p5), %v388_v2  ;;  %391 = vst [vmem:[%s347_s16 + $0x18] sm:$0xff] (%p66_p5), %v390_v3 }
  0x1c PF: > { %p1912_p10 = scmp.ge.s32.totalorder %s2411_s20, 1  ;;  %p396_p11 = scmp.lt.s32.totalorder %s2411_s20, 3 }
  0x1e   : > { %p397_p12 = pnand %p1912_p10, %p396_p11 }
  0x1f   : > { %p447_p13 = scmp.lt.s32.totalorder (!%p397_p12), %s2508_s21, 1  ;;  %v2413_v4 = vmov (!%p397_p12), 0.0   ;;  %vm2414_vm0 = vmmov (!%p397_p12), 0   ;;  %s2976_s0 = sld [smem:[#allocation8_spill]] (!%p397_p12)  ;;  %v2562_v7 = vld [vmem:[%s2956_s2] sm:$0xff] (!%p397_p12)   ;;  %vm465_vm1 = vcmask (!%p397_p12), 130048  }
  0x20   : > { %400 = sbr.rel (%p397_p12) target bundleno = 4404 (0x1134), region = 98  ;;  %2045 = vmatprep.subr.bf16.mxu0 (!%p397_p12), %v2413_v4  ;;  %2047 = vmatprep.mubr.msk.bf16.mxu0 (!%p397_p12), %vm2414_vm0, %v2413_v4  ;;  %s2966_s14 = sand.u32 (!%p397_p12), 1, %s2403_s18   ;;  %v689_v18 = vld [vmem:[%s2957_s3] sm:$0x7] (!%p397_p12)  ;;  %vm701_vm2 = vcmask (!%p397_p12), 1042432   ;;  %v2324_v36 = vld [vmem:[%s2958_s4 + $0x8] sm:$0xff] (!%p397_p12)  }
  0x21   : > { %2063 = vmatprep.subr.bf16.mxu1 (!%p397_p12), %v2413_v4  ;;  %2065 = vmatprep.mubr.msk.bf16.mxu1 (!%p397_p12), %vm2414_vm0, %v2413_v4  ;;  %s2574_s15 = sshll.u32 (!%p397_p12), %s2966_s14, 5  ;;  %v703_v19 = vsel (!%p397_p12), %vm701_vm2, %v689_v18, 0  ;;  %s2416_s29 = smov (!%p397_p12), 4   ;;  %v2323_v35 = vld [vmem:[%s2958_s4] sm:$0xff] (!%p397_p12)   ;;  %vm572_vm3 = vcmask (!%p397_p12), 15360   ;;  %vm575_vm4 = vcmask (!%p397_p12), 31744  }
  0x22   : > { %s2577_s16 = scalar_lea.vmem (!%p397_p12), [#allocation2], %s2574_s15  ;;  %vm697_vm5 = vcmask (!%p397_p12), 48128   ;;  %v2325_v48 = vld [vmem:[%s2958_s4 + $0x10] sm:$0xff] (!%p397_p12)   ;;  %v2326_v49 = vld [vmem:[%s2958_s4 + $0x18] sm:$0xff] (!%p397_p12)   ;;  %v2327_v50 = vld [vmem:[%s2958_s4 + $0x20] sm:$0xff] (!%p397_p12)   ;;  %vm682_vm6 = vcmask (!%p397_p12), 261120  }
  0x23   : > { %v2580_v12 = vld [vmem:[%s2577_s16] sm:$0xff] (!%p397_p12)  ;;  %v2583_v13 = vld [vmem:[%s2577_s16 + $0x8] sm:$0xff] (!%p397_p12)  ;;  %v2328_v51 = vld [vmem:[%s2958_s4 + $0x28] sm:$0xff] (!%p397_p12)   ;;  %vm685_vm7 = vcmask (!%p397_p12), 523264   ;;  %vm795_vm8 = vcmask (!%p397_p12), 785408   ;;  %s2971_s14 = smov (!%p397_p12), 96  }
  0x24   : > { %v578_v17 = vpack.c.bf16 (!%p397_p12), %v2583_v13, %v2580_v12  ;;  %s2729_s12 = scalar_lea.vmem (!%p397_p12), [#allocation3], %s2574_s15 }
  0x27   : > { %s448_s22 = scalar_select %p447_p13, %s2508_s21, 1 }
  0x29   : > { %s1982_s24 = sshll.u32 %s448_s22, 4  ;;  %s2415_s22 = smov 2  }
  0x2a   : > { %s451_s30 = scalar_lea.vmem %s2976_s0, %s1982_s24  ;;  %s2979_s24 = smov 96  }
  0x2b   : > { %v2555_v5 = vld [vmem:[%s451_s30] sm:$0xff]  ;;  %v2557_v6 = vld [vmem:[%s451_s30 + $0x8] sm:$0xff]  ;;  %s2967_s30 = smov 32  }
  0x2c   : > { %v459_v8 = vpack.c.bf16 %v2557_v6, %v2555_v5 }
  0x2e   : > { %2046 = vmatpush3.bf16.msra.mxu0 %v459_v8 }
  0x2f   : > { %2051 = vmatprep.subr.bf16.mxu0 %v2413_v4 }
  0x31   : > { %2048 = vmatmul.mubr.msk.bf16.vlgmr.msra.gmra.mrb[0].mxu0 %vm465_vm1, %v2562_v7 }
  0x32   : > { %2053 = vmatprep.mubr.msk.bf16.mxu0 %vm2414_vm0, %v2413_v4 }
 0x104   : > { %v503_v9 = vpop.f32.mrb[0].mxu0 }
 0x105   : > { %v2049_v10 = vpop.f32.mrb[1].mxu0 }
 0x106   : > { %v506_v11 = vpop.f32.mrb[2].mxu0 }
 0x107   : > { %v510_v14 = vpack.c.bf16 %v506_v11, %v503_v9  ;;  %v2050_v15 = vpop.f32.mrb[3].mxu0  ;;  %v2262_v16 = vpack.i.bf16 %v506_v11, %v503_v9 }
 0x109   : > { %2263 = vrot.lane.b32.xlu0 %v2262_v16, %s2415_s22  ;;  %2052 = vmatpush3.bf16.msra.mxu0 %v510_v14  ;;  %v1922_v16 = vld [vmem:[%s2960_s6] ss:$0 sm:$0xff] }
 0x10a   : > { %2057 = vmatprep.subr.bf16.mxu0 %v2413_v4 }
 0x10c   : > { %2054 = vmatmul.mubr.msk.bf16.vlgmr.msra.gmra.mrb[4].mxu0 %vm465_vm1, %v2562_v7 }
 0x10d   : > { %2058 = vmatpush3.bf16.msra.mxu0 %v578_v17  ;;  %2059 = vmatprep.mubr.msk.bf16.mxu0 %vm2414_vm0, %v2413_v4 }
 0x10e   : > { %2069 = vmatprep.subr.bf16.mxu0 %v2413_v4 }
 0x114   : > { %2060 = vmatmul.mubr.msk.bf16.vlgmr.msra.gmra.mrb[8].mxu0 %vm465_vm1, %v2562_v7 }
 0x115   : > { %2071 = vmatprep.mubr.msk.bf16.mxu0 %vm2414_vm0, %v2413_v4  ;;  %2070 = vmatpush3.bf16.msra.mxu0 %v703_v19 }
 0x116   : > { %2091 = vmatprep.subr.bf16.mxu0 %v2413_v4 }
 0x17b   : > { %v2264_v37 = vpop.permute.xlu0 %2263 }
 0x17c   : > { %v2266_v38 = vunpack.i.h.bf16 %v2264_v37  ;;  %v2265_v39 = vunpack.i.l.bf16 %v2264_v37 }
 0x17e   : > { %v574_v43 = vsel %vm572_vm3, %v2557_v6, %v2266_v38  ;;  %v573_v44 = vsel %vm572_vm3, %v2555_v5, %v2265_v39 }
 0x1df   : > { %v545_v20 = vpop.f32.mrb[4].mxu0 }
 0x1e0   : > { %v552_v21 = vmul.f32 2.0, %v545_v20  ;;  %v2055_v22 = vpop.f32.mrb[5].mxu0 }
 0x1e1   : > { %v548_v23 = vpop.f32.mrb[6].mxu0 }
 0x1e2   : > { %v553_v24 = vmul.f32 2.0, %v548_v23  ;;  %v2056_v25 = vpop.f32.mrb[7].mxu0  ;;  %v554_v26 = vsub.f32 %v552_v21, %v2555_v5 }
 0x1e4   : > { %v555_v27 = vsub.f32 %v553_v24, %v2557_v6 }
 0x1e6   : > { %v2267_v28 = vpack.i.bf16 %v555_v27, %v554_v26 }
 0x1e7   : > { %v613_v29 = vpop.f32.mrb[8].mxu0 }
 0x1e8   : > { %2268 = vrot.lane.b32.xlu0 %v2267_v28, %s2416_s29  ;;  %v2061_v30 = vpop.f32.mrb[9].mxu0  ;;  %s2969_s29 = smov 64  }
 0x1e9   : > { %v616_v31 = vpop.f32.mrb[10].mxu0 }
 0x1ea   : > { %v2062_v32 = vpop.f32.mrb[11].mxu0  ;;  %v2272_v33 = vpack.i.bf16 %v616_v31, %v613_v29  ;;  %v620_v34 = vpack.c.bf16 %v616_v31, %v613_v29 }
 0x1ec   : > { %2273 = vrot.lane.b32.xlu1 %v2272_v33, %s2967_s30  ;;  %2064 = vmatpush3.bf16.msra.mxu1 %v620_v34 }
 0x1ed   : > { %2075 = vmatprep.subr.bf16.mxu1 %v2413_v4 }
 0x1ef   : > { %2066 = vmatmul.mubr.msk.bf16.vlgmr.msra.gmra.mrb[0].mxu1 %vm465_vm1, %v2562_v7 }
 0x1f0   : > { %2087 = vmatprep.mubr.msk.bf16.mxu1 %vm2414_vm0, %v2413_v4  ;;  %2076 = vmatpush3.bf16.msra.mxu1 %v2323_v35 }
 0x1f1   : > { %2077 = vmatprep.subr.bf16.mxu1 %v2413_v4 }
 0x1f4   : > { %2078 = vmatpush3.bf16.msra.mxu1 %v2324_v36 }
 0x1f5   : > { %2079 = vmatprep.subr.bf16.mxu1 %v2413_v4 }
 0x1f8   : > { %2080 = vmatpush3.bf16.msra.mxu1 %v2325_v48 }
 0x1f9   : > { %2081 = vmatprep.subr.bf16.mxu1 %v2413_v4 }
 0x1fc   : > { %2082 = vmatpush3.bf16.msra.mxu1 %v2326_v49 }
 0x1fd   : > { %2083 = vmatprep.subr.bf16.mxu1 %v2413_v4 }
 0x200   : > { %2084 = vmatpush3.bf16.msra.mxu1 %v2327_v50 }
 0x201   : > { %2085 = vmatprep.subr.bf16.mxu1 %v2413_v4 }
 0x204   : > { %2086 = vmatpush3.bf16.msra.mxu1 %v2328_v51 }
 0x205   : > { %2119 = vmatprep.subr.bf16.mxu1 %v2413_v4 }
 0x25a   : > { %v2269_v40 = vpop.permute.xlu0 %2268 }
 0x25b   : > { %v2271_v41 = vunpack.i.h.bf16 %v2269_v40  ;;  %v2270_v42 = vunpack.i.l.bf16 %v2269_v40 }
 0x25d   : > { %v577_v45 = vsel %vm575_vm4, %v574_v43, %v2271_v41  ;;  %v576_v46 = vsel %vm575_vm4, %v573_v44, %v2270_v42  ;;  %v2329_v42 = vld [vmem:[%s2959_s5] sm:$0xff]   ;;  %v2330_v43 = vld [vmem:[%s2959_s5 + $0x8] sm:$0xff]   ;;  %v2331_v44 = vld [vmem:[%s2959_s5 + $0x10] sm:$0xff]  }
 0x25e   : > { %v688_v47 = vpack.c.bf16 %v577_v45, %v576_v46  ;;  %v2274_v1 = vpop.permute.xlu1 %2273  ;;  %v2332_v45 = vld [vmem:[%s2959_s5 + $0x18] sm:$0xff]   ;;  %v2333_v46 = vld [vmem:[%s2959_s5 + $0x20] sm:$0xff]  }
 0x25f   : > { %v2276_v2 = vunpack.i.h.bf16 %v2274_v1  ;;  %v2275_v3 = vunpack.i.l.bf16 %v2274_v1 }
 0x260   : > { %2072 = vmatmul.mubr.msk.bf16.vlgmr.msra.gmra.mrb[12].mxu0 %vm697_vm5, %v688_v47  ;;  %v2334_v47 = vld [vmem:[%s2959_s5 + $0x28] sm:$0xff]  }
 0x261   : > { %2093 = vmatprep.mubr.msk.bf16.mxu0 %vm2414_vm0, %v2413_v4  ;;  %v684_v9 = vsel %vm682_vm6, %v2583_v13, %v2276_v2  ;;  %v683_v10 = vsel %vm682_vm6, %v2580_v12, %v2275_v3 }
 0x2c2   : > { %v655_v52 = vpop.f32.mrb[0].mxu1 }
 0x2c3   : > { %v662_v53 = vmul.f32 2.0, %v655_v52  ;;  %v2067_v54 = vpop.f32.mrb[1].mxu1 }
 0x2c4   : > { %v658_v55 = vpop.f32.mrb[2].mxu1 }
 0x2c5   : > { %v663_v56 = vmul.f32 2.0, %v658_v55  ;;  %v2068_v57 = vpop.f32.mrb[3].mxu1  ;;  %v664_v58 = vsub.f32 %v662_v53, %v2580_v12 }
 0x2c7   : > { %v665_v59 = vsub.f32 %v663_v56, %v2583_v13 }
 0x2c9   : > { %v2277_v60 = vpack.i.bf16 %v665_v59, %v664_v58 }
 0x2cb   : > { %2278 = vrot.lane.b32.xlu1 %v2277_v60, %s2969_s29  ;;  %s2978_s29 = smov 32  }
 0x333   : > { %v739_v61 = vpop.f32.mrb[12].mxu0 }
 0x334   : > { %v2073_v62 = vpop.f32.mrb[13].mxu0  ;;  %v2652_v17 = vadd.f32 %v1922_v16, %v739_v61 }
 0x335   : > { %v742_v63 = vpop.f32.mrb[14].mxu0 }
 0x336   : > { %v2074_v0 = vpop.f32.mrb[15].mxu0  ;;  %v2654_v19 = vadd.f32 %v1922_v16, %v742_v63 }
 0x33d   : > { %v2279_v5 = vpop.permute.xlu1 %2278 }
 0x33e   : > { %v2281_v6 = vunpack.i.h.bf16 %v2279_v5  ;;  %v2280_v8 = vunpack.i.l.bf16 %v2279_v5 }
 0x340   : > { %v687_v11 = vsel %vm685_vm7, %v684_v9, %v2281_v6  ;;  %v686_v14 = vsel %vm685_vm7, %v683_v10, %v2280_v8 }
 0x341   : > { %v746_v15 = vpack.c.bf16 %v687_v11, %v686_v14 }
 0x343   : > { %2088 = vmatmul.mubr.msk.bf16.vlgmr.msra.gmra.mrb[4].mxu1 %vm795_vm8, %v746_v15 }
 0x344   : > { %2121 = vmatprep.mubr.msk.bf16.mxu1 %vm2414_vm0, %v2413_v4 }
 0x416   : > { %v833_v18 = vpop.f32.mrb[4].mxu1 }
 0x417   : > { %v840_v20 = vadd.f32 %v833_v18, %v2652_v17  ;;  %v2089_v21 = vpop.f32.mrb[5].mxu1 }
 0x418   : > { %v836_v22 = vpop.f32.mrb[6].mxu1 }
 0x419   : > { %v1931_v23 = vmul.f32 -1.442695, %v840_v20  ;;  %v841_v24 = vadd.f32 %v836_v22, %v2654_v19  ;;  %v2090_v25 = vpop.f32.mrb[7].mxu1 }
 0x41b   : > { %2353 = vpow2.f32 %v1931_v23  ;;  %v1932_v26 = vmul.f32 -1.442695, %v841_v24 }
 0x41d   : > { %2355 = vpow2.f32 %v1932_v26 }
 0x425   : > { %v2354_v27 = vpop.eup %2353 }
 0x426   : > { %v848_v28 = vadd.f32 1.0, %v2354_v27 }
 0x427   : > { %v2356_v29 = vpop.eup %2355 }
 0x428   : > { %2357 = vrcp.f32 %v848_v28  ;;  %v849_v30 = vadd.f32 1.0, %v2356_v29 }
 0x42a   : > { %2359 = vrcp.f32 %v849_v30 }
 0x432   : > { %v2658_v31 = vpop.eup %2357 }
 0x433   : > { %v854_v33 = vmul.f32 %v2658_v31, %v2580_v12 }
 0x434   : > { %v2660_v32 = vpop.eup %2359 }
 0x435   : > { %v855_v34 = vmul.f32 %v2660_v32, %v2583_v13  ;;  %v1080_v23 = vsub.f32 1.0, %v2660_v32 }
 0x437   : > { %v856_v35 = vpack.c.bf16 %v855_v34, %v854_v33 }
 0x439   : > { %2092 = vmatpush3.bf16.msra.mxu0 %v856_v35  ;;  %v2745_v35 = vld [vmem:[%s2577_s16 + $0x10] sm:$0xff] }
 0x43a   : > { %2097 = vmatprep.subr.bf16.mxu0 %v2413_v4 }
 0x43c   : > { %2094 = vmatmul.mubr.msk.bf16.vlgmr.msra.gmra.mrb[16].mxu0 %vm465_vm1, %v2562_v7 }
 0x43d   : > { %2099 = vmatprep.mubr.msk.bf16.mxu0 %vm2414_vm0, %v2413_v4 }
 0x50f   : > { %v891_v36 = vpop.f32.mrb[16].mxu0 }
 0x510   : > { %v2095_v37 = vpop.f32.mrb[17].mxu0 }
 0x511   : > { %v894_v38 = vpop.f32.mrb[18].mxu0 }
 0x512   : > { %v2282_v39 = vpack.i.bf16 %v894_v38, %v891_v36  ;;  %v898_v40 = vpack.c.bf16 %v894_v38, %v891_v36  ;;  %v2096_v41 = vpop.f32.mrb[19].mxu0  ;;  %v2748_v36 = vld [vmem:[%s2577_s16 + $0x18] sm:$0xff] }
 0x513   : > { %v2335_v41 = vld [vmem:[%s2961_s7] sm:$0xff]  }
 0x514   : > { %2283 = vrot.lane.b32.xlu0 %v2282_v39, %s2967_s30  ;;  %2098 = vmatpush3.bf16.msra.mxu0 %v898_v40  ;;  %s2977_s30 = smov 64   ;;  %v1218_v40 = vpack.c.bf16 %v2748_v36, %v2745_v35 }
 0x515   : > { %2103 = vmatprep.subr.bf16.mxu0 %v2413_v4 }
 0x517   : > { %2100 = vmatmul.mubr.msk.bf16.vlgmr.msra.gmra.mrb[20].mxu0 %vm465_vm1, %v2562_v7 }
 0x518   : > { %2115 = vmatprep.mubr.msk.bf16.mxu0 %vm2414_vm0, %v2413_v4  ;;  %2104 = vmatpush3.bf16.msra.mxu0 %v2329_v42  ;;  %v2336_v42 = vld [vmem:[%s2961_s7 + $0x8] sm:$0xff]  }
 0x519   : > { %2105 = vmatprep.subr.bf16.mxu0 %v2413_v4 }
 0x51c   : > { %2106 = vmatpush3.bf16.msra.mxu0 %v2330_v43  ;;  %v2337_v43 = vld [vmem:[%s2961_s7 + $0x10] sm:$0xff]  }
 0x51d   : > { %2107 = vmatprep.subr.bf16.mxu0 %v2413_v4 }
 0x520   : > { %2108 = vmatpush3.bf16.msra.mxu0 %v2331_v44  ;;  %v2338_v44 = vld [vmem:[%s2961_s7 + $0x18] sm:$0xff]  }
 0x521   : > { %2109 = vmatprep.subr.bf16.mxu0 %v2413_v4 }
 0x524   : > { %2110 = vmatpush3.bf16.msra.mxu0 %v2332_v45  ;;  %v2339_v45 = vld [vmem:[%s2961_s7 + $0x20] sm:$0xff]  }
 0x525   : > { %2111 = vmatprep.subr.bf16.mxu0 %v2413_v4 }
 0x528   : > { %2112 = vmatpush3.bf16.msra.mxu0 %v2333_v46  ;;  %v2340_v46 = vld [vmem:[%s2961_s7 + $0x28] sm:$0xff]  }
 0x529   : > { %2113 = vmatprep.subr.bf16.mxu0 %v2413_v4 }
 0x52c   : > { %2114 = vmatpush3.bf16.msra.mxu0 %v2334_v47 }
 0x52d   : > { %2137 = vmatprep.subr.bf16.mxu0 %v2413_v4 }
 0x586   : > { %v2284_v57 = vpop.permute.xlu0 %2283 }
 0x587   : > { %v2286_v58 = vunpack.i.h.bf16 %v2284_v57  ;;  %v2285_v59 = vunpack.i.l.bf16 %v2284_v57 }
 0x589   : > { %v961_v63 = vsel %vm682_vm6, %v855_v34, %v2286_v58  ;;  %v960_v0 = vsel %vm682_vm6, %v854_v33, %v2285_v59 }
 0x5ea   : > { %v933_v48 = vpop.f32.mrb[20].mxu0 }
 0x5eb   : > { %v940_v49 = vmul.f32 2.0, %v933_v48  ;;  %v2101_v50 = vpop.f32.mrb[21].mxu0 }
 0x5ec   : > { %v936_v51 = vpop.f32.mrb[22].mxu0 }
 0x5ed   : > { %v941_v52 = vmul.f32 2.0, %v936_v51  ;;  %v2102_v53 = vpop.f32.mrb[23].mxu0  ;;  %v942_v54 = vsub.f32 %v940_v49, %v854_v33 }
 0x5ef   : > { %v943_v55 = vsub.f32 %v941_v52, %v855_v34 }
 0x5f1   : > { %v2287_v56 = vpack.i.bf16 %v943_v55, %v942_v54 }
 0x5f3   : > { %2288 = vrot.lane.b32.xlu1 %v2287_v56, %s2977_s30 }
 0x665   : > { %v2289_v60 = vpop.permute.xlu1 %2288 }
 0x666   : > { %v2291_v61 = vunpack.i.h.bf16 %v2289_v60  ;;  %v2290_v62 = vunpack.i.l.bf16 %v2289_v60 }
 0x668   : > { %v963_v1 = vsel %vm685_vm7, %v961_v63, %v2291_v61  ;;  %v962_v2 = vsel %vm685_vm7, %v960_v0, %v2290_v62  ;;  %v2341_v62 = vld [vmem:[%s2962_s8] sm:$0xff]   ;;  %v2342_v63 = vld [vmem:[%s2962_s8 + $0x8] sm:$0xff]  }
 0x669   : > { %v964_v3 = vpack.c.bf16 %v963_v1, %v962_v2 }
 0x66b   : > { %2116 = vmatmul.mubr.msk.bf16.vlgmr.msra.gmra.mrb[24].mxu0 %vm795_vm8, %v964_v3 }
 0x66c   : > { %2139 = vmatprep.mubr.msk.bf16.mxu0 %vm2414_vm0, %v2413_v4 }
 0x73e   : > { %v1050_v5 = vpop.f32.mrb[24].mxu0 }
 0x73f   : > { %1059 = vrot.lane.b32.xlu0 %v1050_v5, %s2977_s30  ;;  %v2117_v6 = vpop.f32.mrb[25].mxu0 }
 0x740   : > { %v1053_v8 = vpop.f32.mrb[26].mxu0 }
 0x741   : > { %1061 = vrot.lane.b32.xlu1 %v1053_v8, %s2977_s30  ;;  %v2118_v9 = vpop.f32.mrb[27].mxu0 }
 0x743   : > { %1071 = vrot.lane.b32.xlu0 %v2580_v12, %s2978_s29 }
 0x745   : > { %1073 = vrot.lane.b32.xlu1 %v2583_v13, %s2978_s29  ;;  %v1079_v13 = vsub.f32 1.0, %v2658_v31 }
 0x7b1   : > { %v1060_v10 = vpop.permute.xlu0 %1059 }
 0x7b2   : > { %v1065_v11 = vadd.f32 %v1060_v10, %v2652_v17 }
 0x7b3   : > { %v1062_v14 = vpop.permute.xlu1 %1061 }
 0x7b4   : > { %2361 = vtanh.f32 %v1065_v11  ;;  %v1066_v15 = vadd.f32 %v1062_v14, %v2654_v19 }
 0x7b5   : > { %v1072_v20 = vpop.permute.xlu0 %1071 }
 0x7b6   : > { %2363 = vtanh.f32 %v1066_v15  ;;  %v1077_v17 = vmul.f32 %v2658_v31, %v1072_v20  ;;  %v2343_v15 = vld [vmem:[%s2962_s8 + $0x10] sm:$0xff]   ;;  %v2346_v20 = vld [vmem:[%s2962_s8 + $0x28] sm:$0xff]  }
 0x7b7   : > { %v1074_v12 = vpop.permute.xlu1 %1073 }
 0x7b8   : > { %v1078_v24 = vmul.f32 %v2660_v32, %v1074_v12 }
 0x7be   : > { %v2362_v16 = vpop.eup %2361 }
 0x7bf   : > { %1083 = vrot.lane.b32.xlu0 %v2362_v16, %s2971_s14  ;;  %v2344_v16 = vld [vmem:[%s2962_s8 + $0x18] sm:$0xff]  }
 0x7c0   : > { %v2364_v18 = vpop.eup %2363 }
 0x7c1   : > { %1085 = vrot.lane.b32.xlu1 %v2364_v18, %s2971_s14  ;;  %v2345_v18 = vld [vmem:[%s2962_s8 + $0x20] sm:$0xff]  }
 0x831   : > { %v1084_v21 = vpop.permute.xlu0 %1083 }
 0x832   : > { %v1089_v22 = vmul.f32 %v1084_v21, %v1079_v13 }
 0x833   : > { %v1086_v19 = vpop.permute.xlu1 %1085 }
 0x834   : > { %v1091_v25 = vadd.f32 %v1089_v22, %v1077_v17  ;;  %v1090_v26 = vmul.f32 %v1086_v19, %v1080_v23 }
 0x836   : > { %v1092_v27 = vadd.f32 %v1090_v26, %v1078_v24  ;;  %1095 = vrot.lane.b32.xlu1 %v1091_v25, %s2971_s14 }
 0x838   : > { %v1106_v28 = vpack.c.bf16 %v1092_v27, %v1091_v25 }
 0x83a   : > { %1108 = vrot.lane.b32.xlu0 %v1106_v28, %s2971_s14 }
 0x83e   : > { %1097 = vrot.lane.b32.xlu0 %v1092_v27, %s2971_s14 }
 0x8a8   : > { %v2726_v29 = vpop.permute.xlu1 %1095 }
 0x8a9   : > { %1101 = vst.msk [vmem:[%s2729_s12] sm:$0xff] %vm682_vm6, %v2726_v29 }
 0x8ac   : > { %v1109_v30 = vpop.permute.xlu0 %1108 }
 0x8ad   : > { %2120 = vmatpush3.bf16.msra.mxu1 %v1109_v30 }
 0x8ae   : > { %2125 = vmatprep.subr.bf16.mxu1 %v2413_v4 }
 0x8b0   : > { %2122 = vmatmul.mubr.msk.bf16.vlgmr.msra.gmra.mrb[8].mxu1 %vm465_vm1, %v2562_v7  ;;  %v2737_v31 = vpop.permute.xlu0 %1097 }
 0x8b1   : > { %1102 = vst.msk [vmem:[%s2729_s12 + $0x8] sm:$0xff] %vm682_vm6, %v2737_v31  ;;  %2127 = vmatprep.mubr.msk.bf16.mxu1 %vm2414_vm0, %v2413_v4 }
 0x983   : > { %v1145_v32 = vpop.f32.mrb[8].mxu1 }
 0x984   : > { %v2123_v33 = vpop.f32.mrb[9].mxu1 }
 0x985   : > { %v1148_v34 = vpop.f32.mrb[10].mxu1 }
 0x986   : > { %v2292_v37 = vpack.i.bf16 %v1148_v34, %v1145_v32  ;;  %v1152_v38 = vpack.c.bf16 %v1148_v34, %v1145_v32  ;;  %v2124_v39 = vpop.f32.mrb[11].mxu1 }
 0x988   : > { %2293 = vrot.lane.b32.xlu1 %v2292_v37, %s2978_s29  ;;  %2126 = vmatpush3.bf16.msra.mxu1 %v1152_v38 }
 0x989   : > { %2131 = vmatprep.subr.bf16.mxu1 %v2413_v4 }
 0x98b   : > { %2128 = vmatmul.mubr.msk.bf16.vlgmr.msra.gmra.mrb[12].mxu1 %vm465_vm1, %v2562_v7 }
 0x98c   : > { %2132 = vmatpush3.bf16.msra.mxu1 %v1218_v40  ;;  %2133 = vmatprep.mubr.msk.bf16.mxu1 %vm2414_vm0, %v2413_v4 }
 0x98d   : > { %2143 = vmatprep.subr.bf16.mxu1 %v2413_v4 }
 0x993   : > { %2134 = vmatmul.mubr.msk.bf16.vlgmr.msra.gmra.mrb[16].mxu1 %vm465_vm1, %v2562_v7 }
 0x994   : > { %2155 = vmatprep.mubr.msk.bf16.mxu1 %vm2414_vm0, %v2413_v4  ;;  %2144 = vmatpush3.bf16.msra.mxu1 %v2335_v41 }
 0x995   : > { %2145 = vmatprep.subr.bf16.mxu1 %v2413_v4 }
 0x998   : > { %2146 = vmatpush3.bf16.msra.mxu1 %v2336_v42 }
 0x999   : > { %2147 = vmatprep.subr.bf16.mxu1 %v2413_v4 }
 0x99c   : > { %2148 = vmatpush3.bf16.msra.mxu1 %v2337_v43  ;;  %v1948_v43 = vld [vmem:[%s2964_s10] ss:$0 sm:$0xff] }
 0x99d   : > { %2149 = vmatprep.subr.bf16.mxu1 %v2413_v4 }
 0x9a0   : > { %2150 = vmatpush3.bf16.msra.mxu1 %v2338_v44 }
 0x9a1   : > { %2151 = vmatprep.subr.bf16.mxu1 %v2413_v4 }
 0x9a4   : > { %2152 = vmatpush3.bf16.msra.mxu1 %v2339_v45 }
 0x9a5   : > { %2153 = vmatprep.subr.bf16.mxu1 %v2413_v4 }
 0x9a8   : > { %2154 = vmatpush3.bf16.msra.mxu1 %v2340_v46 }
 0x9a9   : > { %2175 = vmatprep.subr.bf16.mxu1 %v2413_v4 }
 0x9fa   : > { %v2294_v0 = vpop.permute.xlu1 %2293 }
 0x9fb   : > { %v2296_v1 = vunpack.i.h.bf16 %v2294_v0  ;;  %v2295_v2 = vunpack.i.l.bf16 %v2294_v0 }
 0x9fd   : > { %v1215_v8 = vsel %vm682_vm6, %v2737_v31, %v2296_v1  ;;  %v1214_v9 = vsel %vm682_vm6, %v2726_v29, %v2295_v2 }
 0xa5e   : > { %v1187_v47 = vpop.f32.mrb[12].mxu1 }
 0xa5f   : > { %v1194_v48 = vmul.f32 2.0, %v1187_v47  ;;  %v2129_v49 = vpop.f32.mrb[13].mxu1 }
 0xa60   : > { %v1190_v50 = vpop.f32.mrb[14].mxu1 }
 0xa61   : > { %v1195_v51 = vmul.f32 2.0, %v1190_v50  ;;  %v2130_v52 = vpop.f32.mrb[15].mxu1  ;;  %v1196_v53 = vsub.f32 %v1194_v48, %v2726_v29 }
 0xa63   : > { %v1197_v54 = vsub.f32 %v1195_v51, %v2737_v31 }
 0xa65   : > { %v2297_v55 = vpack.i.bf16 %v1197_v54, %v1196_v53 }
 0xa66   : > { %v1253_v56 = vpop.f32.mrb[16].mxu1 }
 0xa67   : > { %v2135_v57 = vpop.f32.mrb[17].mxu1  ;;  %2298 = vrot.lane.b32.xlu0 %v2297_v55, %s2977_s30 }
 0xa68   : > { %v1256_v58 = vpop.f32.mrb[18].mxu1 }
 0xa69   : > { %v2302_v59 = vpack.i.bf16 %v1256_v58, %v1253_v56  ;;  %v1260_v60 = vpack.c.bf16 %v1256_v58, %v1253_v56  ;;  %v2136_v61 = vpop.f32.mrb[19].mxu1 }
 0xa6b   : > { %2303 = vrot.lane.b32.xlu1 %v2302_v59, %s2978_s29  ;;  %2138 = vmatpush3.bf16.msra.mxu0 %v1260_v60 }
 0xa6c   : > { %2159 = vmatprep.subr.bf16.mxu0 %v2413_v4 }
 0xa6e   : > { %2140 = vmatmul.mubr.msk.bf16.vlgmr.msra.gmra.mrb[28].mxu0 %vm465_vm1, %v2562_v7 }
 0xa6f   : > { %2171 = vmatprep.mubr.msk.bf16.mxu0 %vm2414_vm0, %v2413_v4  ;;  %2160 = vmatpush3.bf16.msra.mxu0 %v2341_v62 }
 0xa70   : > { %2161 = vmatprep.subr.bf16.mxu0 %v2413_v4 }
 0xa73   : > { %2162 = vmatpush3.bf16.msra.mxu0 %v2342_v63 }
 0xa74   : > { %2163 = vmatprep.subr.bf16.mxu0 %v2413_v4 }
 0xa77   : > { %2164 = vmatpush3.bf16.msra.mxu0 %v2343_v15 }
 0xa78   : > { %2165 = vmatprep.subr.bf16.mxu0 %v2413_v4 }
 0xa7b   : > { %2166 = vmatpush3.bf16.msra.mxu0 %v2344_v16 }
 0xa7c   : > { %2167 = vmatprep.subr.bf16.mxu0 %v2413_v4 }
 0xa7f   : > { %2168 = vmatpush3.bf16.msra.mxu0 %v2345_v18 }
 0xa80   : > { %2169 = vmatprep.subr.bf16.mxu0 %v2413_v4 }
 0xa83   : > { %2170 = vmatpush3.bf16.msra.mxu0 %v2346_v20 }
 0xa84   : > { %2181 = vmatprep.subr.bf16.mxu0 %v2413_v4 }
 0xad9   : > { %v2299_v3 = vpop.permute.xlu0 %2298 }
 0xada   : > { %v2301_v5 = vunpack.i.h.bf16 %v2299_v3  ;;  %v2300_v6 = vunpack.i.l.bf16 %v2299_v3 }
 0xadc   : > { %v1216_v10 = vsel %vm685_vm7, %v1214_v9, %v2300_v6  ;;  %v1217_v11 = vsel %vm685_vm7, %v1215_v8, %v2301_v5  ;;  %v2347_v6 = vld [vmem:[%s2963_s9] sm:$0xff]   ;;  %v2348_v8 = vld [vmem:[%s2963_s9 + $0x8] sm:$0xff]   ;;  %v2349_v9 = vld [vmem:[%s2963_s9 + $0x10] sm:$0xff]  }
 0xadd   : > { %v1326_v14 = vpack.c.bf16 %v1217_v11, %v1216_v10  ;;  %v2304_v30 = vpop.permute.xlu1 %2303  ;;  %v2351_v10 = vld [vmem:[%s2963_s9 + $0x20] sm:$0xff]   ;;  %v2352_v11 = vld [vmem:[%s2963_s9 + $0x28] sm:$0xff]  }
 0xade   : > { %v2306_v31 = vunpack.i.h.bf16 %v2304_v30  ;;  %v2305_v32 = vunpack.i.l.bf16 %v2304_v30 }
 0xadf   : > { %2156 = vmatmul.mubr.msk.bf16.vlgmr.msra.gmra.mrb[20].mxu1 %vm795_vm8, %v1326_v14 }
 0xae0   : > { %2177 = vmatprep.mubr.msk.bf16.mxu1 %vm2414_vm0, %v2413_v4  ;;  %v1323_v38 = vsel %vm682_vm6, %v2748_v36, %v2306_v31  ;;  %v1322_v39 = vsel %vm682_vm6, %v2745_v35, %v2305_v32 }
 0xb41   : > { %v1295_v12 = vpop.f32.mrb[28].mxu0 }
 0xb42   : > { %v1302_v13 = vmul.f32 2.0, %v1295_v12  ;;  %v2141_v21 = vpop.f32.mrb[29].mxu0 }
 0xb43   : > { %v1298_v17 = vpop.f32.mrb[30].mxu0 }
 0xb44   : > { %v1303_v22 = vmul.f32 2.0, %v1298_v17  ;;  %v2142_v23 = vpop.f32.mrb[31].mxu0  ;;  %v1304_v19 = vsub.f32 %v1302_v13, %v2745_v35 }
 0xb46   : > { %v1305_v24 = vsub.f32 %v1303_v22, %v2748_v36 }
 0xb48   : > { %v2307_v25 = vpack.i.bf16 %v1305_v24, %v1304_v19 }
 0xb4a   : > { %2308 = vrot.lane.b32.xlu0 %v2307_v25, %s2977_s30 }
 0xbb2   : > { %v1419_v26 = vpop.f32.mrb[20].mxu1 }
 0xbb3   : > { %v2157_v27 = vpop.f32.mrb[21].mxu1  ;;  %v2844_v44 = vadd.f32 %v1948_v43, %v1419_v26 }
 0xbb4   : > { %v1422_v28 = vpop.f32.mrb[22].mxu1 }
 0xbb5   : > { %v2158_v29 = vpop.f32.mrb[23].mxu1  ;;  %v2846_v46 = vadd.f32 %v1948_v43, %v1422_v28 }
 0xbbc   : > { %v2309_v33 = vpop.permute.xlu0 %2308 }
 0xbbd   : > { %v2311_v34 = vunpack.i.h.bf16 %v2309_v33  ;;  %v2310_v37 = vunpack.i.l.bf16 %v2309_v33 }
 0xbbf   : > { %v1325_v40 = vsel %vm685_vm7, %v1323_v38, %v2311_v34  ;;  %v1324_v41 = vsel %vm685_vm7, %v1322_v39, %v2310_v37 }
 0xbc0   : > { %v1426_v42 = vpack.c.bf16 %v1325_v40, %v1324_v41 }
 0xbc2   : > { %2172 = vmatmul.mubr.msk.bf16.vlgmr.msra.gmra.mrb[32].mxu0 %vm795_vm8, %v1426_v42 }
 0xbc3   : > { %2183 = vmatprep.mubr.msk.bf16.mxu0 %vm2414_vm0, %v2413_v4 }
 0xc95   : > { %v1512_v45 = vpop.f32.mrb[32].mxu0 }
 0xc96   : > { %v1519_v47 = vadd.f32 %v1512_v45, %v2844_v44  ;;  %v2173_v48 = vpop.f32.mrb[33].mxu0 }
 0xc97   : > { %v1515_v49 = vpop.f32.mrb[34].mxu0 }
 0xc98   : > { %v1963_v50 = vmul.f32 -1.442695, %v1519_v47  ;;  %v1520_v51 = vadd.f32 %v1515_v49, %v2846_v46  ;;  %v2174_v52 = vpop.f32.mrb[35].mxu0 }
 0xc9a   : > { %2365 = vpow2.f32 %v1963_v50  ;;  %v1964_v53 = vmul.f32 -1.442695, %v1520_v51 }
 0xc9c   : > { %2367 = vpow2.f32 %v1964_v53 }
 0xca4   : > { %v2366_v54 = vpop.eup %2365 }
 0xca5   : > { %v1527_v55 = vadd.f32 1.0, %v2366_v54 }
 0xca6   : > { %v2368_v56 = vpop.eup %2367 }
 0xca7   : > { %2369 = vrcp.f32 %v1527_v55  ;;  %v1528_v57 = vadd.f32 1.0, %v2368_v56 }
 0xca9   : > { %2371 = vrcp.f32 %v1528_v57 }
 0xcb1   : > { %v2850_v58 = vpop.eup %2369 }
 0xcb2   : > { %v1533_v60 = vmul.f32 %v2850_v58, %v2745_v35 }
 0xcb3   : > { %v2852_v59 = vpop.eup %2371 }
 0xcb4   : > { %v1534_v61 = vmul.f32 %v2852_v59, %v2748_v36 }
 0xcb6   : > { %v1535_v62 = vpack.c.bf16 %v1534_v61, %v1533_v60 }
 0xcb8   : > { %2176 = vmatpush3.bf16.msra.mxu1 %v1535_v62 }
 0xcb9   : > { %2187 = vmatprep.subr.bf16.mxu1 %v2413_v4 }
 0xcbb   : > { %2178 = vmatmul.mubr.msk.bf16.vlgmr.msra.gmra.mrb[24].mxu1 %vm465_vm1, %v2562_v7 }
 0xcbc   : > { %2199 = vmatprep.mubr.msk.bf16.mxu1 %vm2414_vm0, %v2413_v4  ;;  %2188 = vmatpush3.bf16.msra.mxu1 %v2347_v6 }
 0xcbd   : > { %2189 = vmatprep.subr.bf16.mxu1 %v2413_v4 }
 0xcc0   : > { %2190 = vmatpush3.bf16.msra.mxu1 %v2348_v8 }
 0xcc1   : > { %2191 = vmatprep.subr.bf16.mxu1 %v2413_v4 }
 0xcc4   : > { %2192 = vmatpush3.bf16.msra.mxu1 %v2349_v9 }
 0xcc5   : > { %2193 = vmatprep.subr.bf16.mxu1 %v2413_v4 }
 0xd8e   : > { %v1570_v63 = vpop.f32.mrb[24].mxu1 }
 0xd8f   : > { %v2179_v0 = vpop.f32.mrb[25].mxu1 }
 0xd90   : > { %v1573_v1 = vpop.f32.mrb[26].mxu1 }
 0xd91   : > { %v2312_v2 = vpack.i.bf16 %v1573_v1, %v1570_v63  ;;  %v1577_v3 = vpack.c.bf16 %v1573_v1, %v1570_v63  ;;  %v2180_v5 = vpop.f32.mrb[27].mxu1 }
 0xd93   : > { %2313 = vrot.lane.b32.xlu1 %v2312_v2, %s2978_s29  ;;  %2182 = vmatpush3.bf16.msra.mxu0 %v1577_v3 }
 0xd96   : > { %2184 = vmatmul.mubr.msk.bf16.vlgmr.msra.gmra.mrb[36].mxu0 %vm465_vm1, %v2562_v7  ;;  %v2350_v7 = vld [vmem:[%s2963_s9 + $0x18] sm:$0xff]  }
 0xd97   : > { %2194 = vmatpush3.bf16.msra.mxu1 %v2350_v7 }
 0xd98   : > { %2195 = vmatprep.subr.bf16.mxu1 %v2413_v4 }
 0xd9b   : > { %2196 = vmatpush3.bf16.msra.mxu1 %v2351_v10 }
 0xd9c   : > { %2197 = vmatprep.subr.bf16.mxu1 %v2413_v4 }
 0xd9f   : > { %2198 = vmatpush3.bf16.msra.mxu1 %v2352_v11 }
 0xe05   : > { %v2314_v22 = vpop.permute.xlu1 %2313 }
 0xe06   : > { %v2316_v23 = vunpack.i.h.bf16 %v2314_v22  ;;  %v2315_v19 = vunpack.i.l.bf16 %v2314_v22 }
 0xe08   : > { %v1640_v26 = vsel %vm682_vm6, %v1534_v61, %v2316_v23  ;;  %v1639_v27 = vsel %vm682_vm6, %v1533_v60, %v2315_v19 }
 0xe69   : > { %v1612_v14 = vpop.f32.mrb[36].mxu0 }
 0xe6a   : > { %v1619_v15 = vmul.f32 2.0, %v1612_v14  ;;  %v2185_v16 = vpop.f32.mrb[37].mxu0 }
 0xe6b   : > { %v1615_v18 = vpop.f32.mrb[38].mxu0 }
 0xe6c   : > { %v1620_v20 = vmul.f32 2.0, %v1615_v18  ;;  %v2186_v12 = vpop.f32.mrb[39].mxu0  ;;  %v1621_v13 = vsub.f32 %v1619_v15, %v1533_v60 }
 0xe6e   : > { %v1622_v21 = vsub.f32 %v1620_v20, %v1534_v61 }
 0xe70   : > { %v2317_v17 = vpack.i.bf16 %v1622_v21, %v1621_v13 }
 0xe72   : > { %2318 = vrot.lane.b32.xlu0 %v2317_v17, %s2977_s30 }
 0xee4   : > { %v2319_v4 = vpop.permute.xlu0 %2318 }
 0xee5   : > { %v2321_v24 = vunpack.i.h.bf16 %v2319_v4  ;;  %v2320_v25 = vunpack.i.l.bf16 %v2319_v4 }
 0xee7   : > { %v1642_v28 = vsel %vm685_vm7, %v1640_v26, %v2321_v24  ;;  %v1641_v29 = vsel %vm685_vm7, %v1639_v27, %v2320_v25 }
 0xee8   : > { %v1643_v30 = vpack.c.bf16 %v1642_v28, %v1641_v29 }
 0xeea   : > { %2200 = vmatmul.mubr.msk.bf16.vlgmr.msra.gmra.mrb[28].mxu1 %vm795_vm8, %v1643_v30 }
 0xfbd   : > { %v1729_v31 = vpop.f32.mrb[28].mxu1 }
 0xfbe   : > { %1738 = vrot.lane.b32.xlu1 %v1729_v31, %s2977_s30  ;;  %v2201_v32 = vpop.f32.mrb[29].mxu1 }
 0xfbf   : > { %v1732_v33 = vpop.f32.mrb[30].mxu1 }
 0xfc0   : > { %1740 = vrot.lane.b32.xlu0 %v1732_v33, %s2977_s30  ;;  %v2202_v34 = vpop.f32.mrb[31].mxu1  ;;  %s2980_s30 = sand.u32 1, %s2403_s18  }
 0xfc2   : > { %1750 = vrot.lane.b32.xlu1 %v2745_v35, %s2978_s29 }
 0xfc4   : > { %1752 = vrot.lane.b32.xlu0 %v2748_v36, %s2978_s29  ;;  %v1758_v36 = vsub.f32 1.0, %v2850_v58  ;;  %s1784_s29 = scalar_lea.sflag [#allocation4], %s2980_s30 }
0x1030   : > { %v1739_v37 = vpop.permute.xlu1 %1738 }
0x1031   : > { %v1744_v38 = vadd.f32 %v1739_v37, %v2844_v44 }
0x1032   : > { %v1741_v39 = vpop.permute.xlu0 %1740 }
0x1033   : > { %2373 = vtanh.f32 %v1744_v38  ;;  %v1745_v40 = vadd.f32 %v1741_v39, %v2846_v46  ;;  %v1759_v46 = vsub.f32 1.0, %v2852_v59 }
0x1034   : > { %v1751_v43 = vpop.permute.xlu1 %1750 }
0x1035   : > { %2375 = vtanh.f32 %v1745_v40  ;;  %v1756_v44 = vmul.f32 %v2850_v58, %v1751_v43 }
0x1036   : > { %v1753_v35 = vpop.permute.xlu0 %1752 }
0x1037   : > { %v1757_v49 = vmul.f32 %v2852_v59, %v1753_v35 }
0x103d   : > { %v2374_v41 = vpop.eup %2373 }
0x103e   : > { %1762 = vrot.lane.b32.xlu1 %v2374_v41, %s2979_s24 }
0x103f   : > { %v2376_v42 = vpop.eup %2375 }
0x1040   : > { %1764 = vrot.lane.b32.xlu0 %v2376_v42, %s2979_s24 }
0x10b0   : > { %v1763_v45 = vpop.permute.xlu1 %1762 }
0x10b1   : > { %v1768_v47 = vmul.f32 %v1763_v45, %v1758_v36 }
0x10b2   : > { %v1765_v48 = vpop.permute.xlu0 %1764 }
0x10b3   : > { %v1770_v50 = vadd.f32 %v1768_v47, %v1756_v44  ;;  %v1769_v51 = vmul.f32 %v1765_v48, %v1759_v46 }
0x10b5   : > { %v1771_v52 = vadd.f32 %v1769_v51, %v1757_v49  ;;  %1774 = vrot.lane.b32.xlu1 %v1770_v50, %s2979_s24 }
0x10b7   : > { %1776 = vrot.lane.b32.xlu0 %v1771_v52, %s2979_s24 }
0x1127   : > { %v1775_v53 = vpop.permute.xlu1 %1774 }
0x1128   : > { %1974 = vst.msk [vmem:[%s2729_s12 + $0x10] sm:$0xff] %vm682_vm6, %v1775_v53 }
0x1129   : > { %v1777_v54 = vpop.permute.xlu0 %1776 }
0x112a   : > { %1975 = vst.msk [vmem:[%s2729_s12 + $0x18] sm:$0xff] %vm682_vm6, %v1777_v54 }
0x112b   : > { %s1983_s25 = sshll.u32 %s2508_s21, 8  ;;  %s1813_s15 = sshll.u32 %s2729_s12, 4  ;;  %s1814_s15 = int_to_ptr.vmem [resolvable:$true] %s1813_s15 }
0x112c   : > { %s1796_s22 = scalar_lea.hbm %s2965_s11, %s1983_s25  ;;  %s2420_s0 = smov 256  }
0x112d   : > { %2203 = sst [smem:[#allocation6]] (%p2526_p6), %s2420_s0  ;;  %s2421_s14 = smov 512  }
0x112e   : > { %2204 = sst [smem:[#allocation6 + $0x1]] (%p2526_p6), %s2421_s14  ;;  %s2422_s24 = smov 2  }
0x112f   : > { %2205 = sst [smem:[#allocation6 + $0x2]] (%p2526_p6), %s2422_s24  ;;  %s2423_s30 = smov 128  }
0x1130   : > { %2206 = sst [smem:[#allocation6 + $0x3]] (%p2526_p6), %s2423_s30  ;;  %s2424_s21 = smov 8  }
0x1131   : > { %2207 = sst [smem:[#allocation6 + $0x4]] (%p2526_p6), %s2423_s30  ;;  %s2425_s12 = smov [#allocation5]  }
0x1132   : > { %2208 = sst [smem:[#allocation6 + $0x5]] (%p2526_p6), %s2424_s21  ;;  %s2426_s25 = smov 0  }
0x1133   : > { %2209 = dma.general (%p2526_p6), %s1814_s15, 512, %s1796_s22, %s1784_s29, %s2425_s12, [#allocation6], %s2426_s25, 0  }
0x1134 PF: > { %s1841_s16 = sand.u32 1, %s2399_s17   ;;  %p2212_p0 = pnand %p1908_p9, %p2530_p8 }
0x1135   : > { %s1842_s13 = scalar_lea.sflag [#allocation4], %s1841_s16 }
0x1136   : > { %2394 = dma.done.wait (!%p2212_p0), %s1842_s13, 512  }
0x1137   : > { %2396 = vsyncadd (!%p2212_p0), %s1842_s13, 4294966784  ;;  %p21_p1 = scmp.ge.s32.totalorder %s2512_s23, 4   ;;  %s2981_s17 = smov %s2403_s18 }
0x1138   : > { %s2982_s18 = smov %s2407_s19  ;;  %s2983_s19 = smov %s2524_s26 }
0x1139   : > { %s2984_s20 = smov %s2512_s23  ;;  %23 = sbr.rel (!%p21_p1) target bundleno = 5 (0x5), region = 152 }
0x1140   :  { %1847 = vsyncpa [#allocation4], 1 }
0x1141   :  { %1849 = vsyncpa [#allocation4 + $0x1], 1 }

</bundles_post_ra>
